<compile_context>
chip_gen: v6e
topology: v6e:2x2x1
jax: 0.10.0
libtpu: 0.0.40
codegen_flags: <defaults>
</compile_context>

<pallas_src>
import functools

import jax
import jax.numpy as jnp
from jax import lax
from jax.experimental import pallas as pl
from jax.experimental.pallas import tpu as pltpu

_INV_SQRT2 = 0.7071067811865476
_SQRT_2_OVER_PI = 0.7978845608028654


def _round_up(x, m):
    return ((x + m - 1) // m) * m


def _query_vmem_capacity():
    try:
        return int(pltpu.get_tpu_info().vmem_capacity_bytes)
    except Exception:
        return 64 << 20  # conservative fallback: v7x has the smallest per-TC VMEM


_VMEM_CAPACITY = _query_vmem_capacity()

try:
    _SINGLE_BUFFER = pl.Buffered(1)  # constant-index weight blocks need no double buffer
except Exception:  # pragma: no cover - older Pallas without pipeline_mode support
    _SINGLE_BUFFER = None


def _const_weight_spec(shape, index_map, single_buffer):
    """BlockSpec for a weight/bias block; single-buffered when requested & supported."""
    if single_buffer and _SINGLE_BUFFER is not None:
        try:
            return pl.BlockSpec(shape, index_map, pipeline_mode=_SINGLE_BUFFER)
        except Exception:
            pass
    return pl.BlockSpec(shape, index_map)


def _gelu_f32(h, approximate):
    if approximate:
        # tanh approximation -> EUP slot (otherwise idle here)
        return 0.5 * h * (1.0 + jnp.tanh(_SQRT_2_OVER_PI * (h + 0.044715 * h * h * h)))
    # exact erf-based GELU (PyTorch nn.GELU default)
    return 0.5 * h * (1.0 + lax.erf(h * _INV_SQRT2))


def _vmem_cost_bytes(tm, kh, c_in, c_out, c_itemsize, out_itemsize,
                     weights_single_buffered, resident):
    """Resident-VMEM model for one grid step."""
    wbuf = 1 if (resident and weights_single_buffered) else 2
    x_t = 2 * tm * c_in * c_itemsize            # input row tile (double-buffered)
    o_t = 2 * tm * c_out * out_itemsize         # output row tile (double-buffered)
    w1_t = wbuf * c_in * kh * c_itemsize
    w2_t = wbuf * kh * c_out * c_itemsize
    b_t = wbuf * (kh + c_out) * 4
    acc = 0 if resident else tm * c_out * 4     # f32 fc2 accumulator (chunked path only)
    h_t = tm * kh * 4                           # f32 fc1/GELU intermediate
    if c_itemsize < 4:
        h_t += tm * kh * c_itemsize             # low-precision copy fed to the 2nd dot
    return x_t + o_t + w1_t + w2_t + b_t + acc + h_t


def _mlp_kernel_resident(x_ref, w1_ref, b1_ref, w2_ref, b2_ref, o_ref, *, approx_gelu):
    """Full hidden dim resident: single fused pass, no accumulator scratch."""
    x = x_ref[...]
    h = jnp.dot(x, w1_ref[...], preferred_element_type=jnp.float32)
    h = h + b1_ref[...].astype(jnp.float32)
    h = _gelu_f32(h, approx_gelu)
    # nn.Dropout(p=0.0) is the identity in forward — nothing to do.
    o = jnp.dot(h.astype(x.dtype), w2_ref[...], preferred_element_type=jnp.float32)
    o_ref[...] = (o + b2_ref[...].astype(jnp.float32)).astype(o_ref.dtype)


def _mlp_kernel_chunked(x_ref, w1_ref, b1_ref, w2_ref, b2_ref, o_ref, acc_ref, *,
                        approx_gelu):
    """Hidden dim streamed in chunks along a reduction grid axis (f32 accumulator)."""
    k = pl.program_id(1)

    @pl.when(k == 0)
    def _():
        acc_ref[...] = jnp.zeros_like(acc_ref)

    x = x_ref[...]
    h = jnp.dot(x, w1_ref[...], preferred_element_type=jnp.float32)
    h = h + b1_ref[...].astype(jnp.float32)
    h = _gelu_f32(h, approx_gelu)
    acc_ref[...] += jnp.dot(h.astype(x.dtype), w2_ref[...],
                            preferred_element_type=jnp.float32)

    @pl.when(k == pl.num_programs(1) - 1)
    def _():
        o_ref[...] = (acc_ref[...] + b2_ref[...].astype(jnp.float32)).astype(o_ref.dtype)


@functools.partial(jax.jit, static_argnames=("block_m", "vmem_budget_mb",
                                              "use_bf16_matmul", "gelu_approximate"))
def mlp_pallas(x, w1, b1, w2, b2, *, block_m=512, vmem_budget_mb=None,
               use_bf16_matmul=False, gelu_approximate=False):
    """x: (B, N, C_in) -> (B, N, C_out). Fused fc1 -> GELU -> fc2 in one Pallas kernel."""
    B, N, C_in = x.shape
    C_hidden = w1.shape[1]
    C_out = w2.shape[1]
    M = B * N

    out_dtype = x.dtype
    out_itemsize = jnp.dtype(out_dtype).itemsize
    # Opt-in bf16 MXU path for f32 inputs (f32 accumulation & GELU retained).
    cdtype = jnp.bfloat16 if (use_bf16_matmul and x.dtype == jnp.float32) else x.dtype
    c_itemsize = jnp.dtype(cdtype).itemsize

    # Generation-aware VMEM policy (v5e/v6e: 128 MiB, v7x: 64 MiB per TensorCore).
    if vmem_budget_mb is None:
        budget = max(32 << 20, _VMEM_CAPACITY - (16 << 20))
    else:
        budget = vmem_budget_mb << 20
    vmem_cap = max(32 << 20, _VMEM_CAPACITY - (8 << 20))   # never claim full physical VMEM

    # ---- tile selection (all static Python on shapes) --------------------------
    # Lane-dense channel dims: round up to multiples of 128.
    c_in_p = _round_up(C_in, 128)
    c_out_p = _round_up(C_out, 128)
    c_hid_p = _round_up(C_hidden, 128)

    # Single-buffer the (constant-index) weight blocks only when they are big enough
    # for the saving to matter; tiny weights keep default double buffering.
    weight_bytes = c_itemsize * (c_in_p * c_hid_p + c_hid_p * c_out_p)
    sb_weights = (_SINGLE_BUFFER is not None) and (weight_bytes >= (4 << 20))

    def cost(tm_, kh_):
        return _vmem_cost_bytes(tm_, kh_, c_in_p, c_out_p, c_itemsize, out_itemsize,
                                sb_weights, kh_ == c_hid_p)

    # Row tile: as large as possible (MXU occupancy, amortized pipeline overhead),
    # but no larger than the sublane-rounded row count. bf16 packs 2 rows/sublane.
    row_quant = 16 if c_itemsize < 4 else 8
    tm = max(row_quant, min(_round_up(block_m, row_quant), _round_up(M, row_quant)))

    # Guarantee >= 2 row tiles (floor 256) so v7x's two TensorCores / megacore can
    # shard the parallel axis instead of idling on a single tile.
    while _round_up(M, tm) // tm < 2 and tm > 256:
        tm = max(256, _round_up(tm // 2, row_quant))

    # Hidden tile: keep the full hidden dim resident when it fits the VMEM budget;
    # otherwise stream 128-aligned hidden chunks (floor 256: full 256x256 MXU passes)
    # along a reduction grid axis. Shrink tm as a last resort.
    kh_floor = min(c_hid_p, 256)
    while True:
        kh = c_hid_p
        while kh > kh_floor and cost(tm, kh) > budget:
            kh = max(kh_floor, ((kh // 2) // 128) * 128)
        if cost(tm, kh) <= budget or tm <= 128:
            break
        tm = max(row_quant, ((tm // 2) // row_quant) * row_quant)

    c_hid_pad = _round_up(c_hid_p, kh)   # make the hidden chunk divide the padded hidden
    n_k = c_hid_pad // kh
    m_pad = _round_up(M, tm)
    m_tiles = m_pad // tm

    # ---- zero padding (exact; no-ops when already aligned) ---------------------
    x2d = jnp.pad(x.reshape(M, C_in), ((0, m_pad - M), (0, c_in_p - C_in))).astype(cdtype)
    w1_p = jnp.pad(w1, ((0, c_in_p - C_in), (0, c_hid_pad - C_hidden))).astype(cdtype)
    b1_p = jnp.pad(b1, (0, c_hid_pad - C_hidden)).reshape(1, c_hid_pad)
    w2_p = jnp.pad(w2, ((0, c_hid_pad - C_hidden), (0, c_out_p - C_out))).astype(cdtype)
    b2_p = jnp.pad(b2, (0, c_out_p - C_out)).reshape(1, c_out_p)

    step_cost = cost(tm, kh)
    vmem_limit = int(min(vmem_cap, max(32 << 20, step_cost + (8 << 20))))

    flops = 2 * m_pad * c_hid_pad * (c_in_p + c_out_p)
    weight_hbm = (c_itemsize * (c_in_p * c_hid_pad + c_hid_pad * c_out_p)
                  + 4 * (c_hid_pad + c_out_p))
    weight_reads = 1 if n_k == 1 else m_tiles   # chunked path re-streams weights per row tile
    bytes_accessed = (c_itemsize * m_pad * c_in_p
                      + out_itemsize * m_pad * c_out_p
                      + weight_reads * weight_hbm)

    if n_k == 1:
        # Weights fully resident: 1-D grid, no accumulator, weights DMA'd once.
        kernel = functools.partial(_mlp_kernel_resident, approx_gelu=gelu_approximate)
        grid_spec = pltpu.PrefetchScalarGridSpec(
            num_scalar_prefetch=0,
            grid=(m_tiles,),
            in_specs=[
                pl.BlockSpec((tm, c_in_p), lambda i: (i, 0)),                      # x tile
                _const_weight_spec((c_in_p, c_hid_pad), lambda i: (0, 0), sb_weights),
                _const_weight_spec((1, c_hid_pad), lambda i: (0, 0), sb_weights),
                _const_weight_spec((c_hid_pad, c_out_p), lambda i: (0, 0), sb_weights),
                _const_weight_spec((1, c_out_p), lambda i: (0, 0), sb_weights),
            ],
            out_specs=pl.BlockSpec((tm, c_out_p), lambda i: (i, 0)),
        )
        dims = ("parallel",)
    else:
        # Hidden dim streamed: reduction axis last, f32 VMEM accumulator.
        kernel = functools.partial(_mlp_kernel_chunked, approx_gelu=gelu_approximate)
        grid_spec = pltpu.PrefetchScalarGridSpec(
            num_scalar_prefetch=0,
            grid=(m_tiles, n_k),
            in_specs=[
                pl.BlockSpec((tm, c_in_p), lambda i, k: (i, 0)),       # x row tile (resident over k)
                pl.BlockSpec((c_in_p, kh), lambda i, k: (0, k)),       # W1 hidden chunk
                pl.BlockSpec((1, kh), lambda i, k: (0, k)),            # b1 hidden chunk
                pl.BlockSpec((kh, c_out_p), lambda i, k: (k, 0)),      # W2 hidden chunk
                pl.BlockSpec((1, c_out_p), lambda i, k: (0, 0)),       # b2
            ],
            out_specs=pl.BlockSpec((tm, c_out_p), lambda i, k: (i, 0)),
            scratch_shapes=[pltpu.VMEM((tm, c_out_p), jnp.float32)],   # f32 fc2 accumulator
        )
        dims = ("parallel", "arbitrary")

    out2d = pl.pallas_call(
        kernel,
        out_shape=jax.ShapeDtypeStruct((m_pad, c_out_p), out_dtype),
        grid_spec=grid_spec,
        compiler_params=pltpu.CompilerParams(
            dimension_semantics=dims,
            vmem_limit_bytes=vmem_limit,
        ),
        cost_estimate=pl.CostEstimate(
            flops=flops,
            transcendentals=m_pad * c_hid_pad,
            bytes_accessed=bytes_accessed,
        ),
    )(x2d, w1_p, b1_p, w2_p, b2_p)

    return out2d[:M, :C_out].reshape(B, N, C_out)


def reference_mlp(x, w1, b1, w2, b2):
    h = jnp.einsum("bnc,ch->bnh", x, w1) + b1
    h = 0.5 * h * (1.0 + lax.erf(h * _INV_SQRT2))
    return jnp.einsum("bnh,ho->bno", h, w2) + b2


if __name__ == "__main__":
    key = jax.random.PRNGKey(0)
    k_x, k_w1, k_b1, k_w2, k_b2, k_x2 = jax.random.split(key, 6)

    # Small shapes consistent with the module: (B, N, C_in) tokens through an MLP.
    B, N = 2, 8
    in_features, hidden_features, out_features = 16, 32, 16

    x = jax.random.normal(k_x, (B, N, in_features), dtype=jnp.float32)
    # deterministic synthetic parameters (nn.Linear shapes, stored transposed)
    w1 = jax.random.normal(k_w1, (in_features, hidden_features), jnp.float32) * 0.1
    b1 = jax.random.normal(k_b1, (hidden_features,), jnp.float32) * 0.1
    w2 = jax.random.normal(k_w2, (hidden_features, out_features), jnp.float32) * 0.1
    b2 = jax.random.normal(k_b2, (out_features,), jnp.float32) * 0.1

    out = mlp_pallas(x, w1, b1, w2, b2)
    jax.block_until_ready(out)
    ref = reference_mlp(x, w1, b1, w2, b2)
    assert out.shape == (B, N, out_features)
    assert jnp.allclose(out, ref, atol=1e-4, rtol=1e-4), "mismatch vs reference (case 1)"

    # Ragged row count exercises the M-padding path with the same weights.
    x2 = jax.random.normal(k_x2, (2, 7, in_features), dtype=jnp.float32)
    out2 = mlp_pallas(x2, w1, b1, w2, b2)
    jax.block_until_ready(out2)
    ref2 = reference_mlp(x2, w1, b1, w2, b2)
    assert out2.shape == (2, 7, out_features)
    assert jnp.allclose(out2, ref2, atol=1e-4, rtol=1e-4), "mismatch vs reference (case 2)"

    # Opt-in bf16 MXU fast path (numerics intentionally looser vs. the f32 reference).
    out3 = mlp_pallas(x, w1, b1, w2, b2, use_bf16_matmul=True)
    jax.block_until_ready(out3)
    assert out3.shape == (B, N, out_features)
    assert jnp.allclose(out3, ref, atol=5e-2, rtol=5e-2), "mismatch vs reference (bf16 path)"

    print("KERNEL_OK")
</pallas_src>

<mosaic_0001>
module attributes {stable_mosaic.version = 11 : i64} {
  func.func @_mlp_kernel_resident(%arg0: i32, %arg1: memref<16x128xf32, #tpu.memory_space<vmem>>, %arg2: memref<128x128xf32, #tpu.memory_space<vmem>>, %arg3: memref<1x128xf32, #tpu.memory_space<vmem>>, %arg4: memref<128x128xf32, #tpu.memory_space<vmem>>, %arg5: memref<1x128xf32, #tpu.memory_space<vmem>>, %arg6: memref<16x128xf32, #tpu.memory_space<vmem>>) attributes {dimension_semantics = [#tpu.dimension_semantics<parallel>], iteration_bounds = array<i64: 1>, scalar_prefetch = 0 : i64, scratch_operands = 0 : i64, tpu.core_type = #tpu.core_type<tc>, window_params = [{transform_indices = @transform_0, window_bounds = array<i64: 16, 128>}, {pipeline_mode = #tpu.pipeline_mode<synchronous>, transform_indices = @transform_1, window_bounds = array<i64: 128, 128>}, {pipeline_mode = #tpu.pipeline_mode<synchronous>, transform_indices = @transform_2, window_bounds = array<i64: 1, 128>}, {pipeline_mode = #tpu.pipeline_mode<synchronous>, transform_indices = @transform_3, window_bounds = array<i64: 128, 128>}, {pipeline_mode = #tpu.pipeline_mode<synchronous>, transform_indices = @transform_4, window_bounds = array<i64: 1, 128>}, {transform_indices = @transform_5, window_bounds = array<i64: 16, 128>}]} {
    %c0 = arith.constant 0 : index
    %c0_0 = arith.constant 0 : index
    %0 = vector.load %arg1[%c0, %c0_0] : memref<16x128xf32, #tpu.memory_space<vmem>>, vector<16x128xf32>
    %c0_1 = arith.constant 0 : index
    %c0_2 = arith.constant 0 : index
    %1 = vector.load %arg2[%c0_1, %c0_2] : memref<128x128xf32, #tpu.memory_space<vmem>>, vector<128x128xf32>
    %cst = arith.constant dense<0.000000e+00> : vector<16x128xf32>
    %2 = tpu.matmul %0, %1, %cst {dimension_numbers = #tpu.dot_dimension_numbers<[1], [0], [0], [1], [0, 0, 1, 1], [], []>} : vector<16x128xf32>, vector<128x128xf32>, vector<16x128xf32> -> vector<16x128xf32>
    %c0_3 = arith.constant 0 : index
    %c0_4 = arith.constant 0 : index
    %3 = vector.load %arg3[%c0_3, %c0_4] : memref<1x128xf32, #tpu.memory_space<vmem>>, vector<1x128xf32>
    %4 = vector.broadcast %3 : vector<1x128xf32> to vector<16x128xf32>
    %5 = arith.addf %2, %4 : vector<16x128xf32>
    %cst_5 = arith.constant 5.000000e-01 : f32
    %6 = vector.broadcast %cst_5 : f32 to vector<16x128xf32>
    %7 = arith.mulf %6, %5 : vector<16x128xf32>
    %cst_6 = arith.constant 0.707106769 : f32
    %8 = vector.broadcast %cst_6 : f32 to vector<16x128xf32>
    %9 = arith.mulf %5, %8 : vector<16x128xf32>
    %10 = math.erf %9 : vector<16x128xf32>
    %cst_7 = arith.constant 1.000000e+00 : f32
    %11 = vector.broadcast %cst_7 : f32 to vector<16x128xf32>
    %12 = arith.addf %11, %10 : vector<16x128xf32>
    %13 = arith.mulf %7, %12 : vector<16x128xf32>
    %c0_8 = arith.constant 0 : index
    %c0_9 = arith.constant 0 : index
    %14 = vector.load %arg4[%c0_8, %c0_9] : memref<128x128xf32, #tpu.memory_space<vmem>>, vector<128x128xf32>
    %cst_10 = arith.constant dense<0.000000e+00> : vector<16x128xf32>
    %15 = tpu.matmul %13, %14, %cst_10 {dimension_numbers = #tpu.dot_dimension_numbers<[1], [0], [0], [1], [0, 0, 1, 1], [], []>} : vector<16x128xf32>, vector<128x128xf32>, vector<16x128xf32> -> vector<16x128xf32>
    %c0_11 = arith.constant 0 : index
    %c0_12 = arith.constant 0 : index
    %16 = vector.load %arg5[%c0_11, %c0_12] : memref<1x128xf32, #tpu.memory_space<vmem>>, vector<1x128xf32>
    %17 = vector.broadcast %16 : vector<1x128xf32> to vector<16x128xf32>
    %18 = arith.addf %15, %17 : vector<16x128xf32>
    %c0_13 = arith.constant 0 : index
    %c0_14 = arith.constant 0 : index
    %19 = vector.load %arg6[%c0_13, %c0_14] : memref<16x128xf32, #tpu.memory_space<vmem>>, vector<16x128xf32>
    tpu.vector_store %arg6[%c0_13, %c0_14], %18 {strides = array<i32>} : memref<16x128xf32, #tpu.memory_space<vmem>>, vector<16x128xf32>,
    return
  }
  func.func @transform_0(%arg0: i32) -> (i32, i32) {
    %c0_i32 = arith.constant 0 : i32
    %c0_i32_0 = arith.constant 0 : i32
    return %arg0, %c0_i32 : i32, i32
  }
  func.func @transform_1(%arg0: i32) -> (i32, i32) {
    %c0_i32 = arith.constant 0 : i32
    %c0_i32_0 = arith.constant 0 : i32
    %c0_i32_1 = arith.constant 0 : i32
    return %c0_i32, %c0_i32_0 : i32, i32
  }
  func.func @transform_2(%arg0: i32) -> (i32, i32) {
    %c0_i32 = arith.constant 0 : i32
    %c0_i32_0 = arith.constant 0 : i32
    %c0_i32_1 = arith.constant 0 : i32
    return %c0_i32, %c0_i32_0 : i32, i32
  }
  func.func @transform_3(%arg0: i32) -> (i32, i32) {
    %c0_i32 = arith.constant 0 : i32
    %c0_i32_0 = arith.constant 0 : i32
    %c0_i32_1 = arith.constant 0 : i32
    return %c0_i32, %c0_i32_0 : i32, i32
  }
  func.func @transform_4(%arg0: i32) -> (i32, i32) {
    %c0_i32 = arith.constant 0 : i32
    %c0_i32_0 = arith.constant 0 : i32
    %c0_i32_1 = arith.constant 0 : i32
    return %c0_i32, %c0_i32_0 : i32, i32
  }
  func.func @transform_5(%arg0: i32) -> (i32, i32) {
    %c0_i32 = arith.constant 0 : i32
    %c0_i32_0 = arith.constant 0 : i32
    return %arg0, %c0_i32 : i32, i32
  }
}

</mosaic_0001>

<bundles_post_ra>
// kernel: mlp_pallas.1
= control target key start
LH: loop header
LB: loop body
LE: loop exit
PB: predicated region body
PF: predicated region fallthrough
CT: control target
= control target key end

     0   :  { %s490_s1 = inlined_call_operand.vmem [shape: f32[128,128], index: 1, kind: input, shape index: {}]   ;;  %s491_s0 = inlined_call_operand.vmem [shape: f32[16,128], index: 0, kind: input, shape index: {}]   ;;  %s492_s3 = inlined_call_operand.vmem [shape: f32[128,128], index: 3, kind: input, shape index: {}]   ;;  %s493_s2 = inlined_call_operand.vmem [shape: f32[1,128], index: 2, kind: input, shape index: {}]   ;;  %s494_s4 = inlined_call_operand.vmem [shape: f32[1,128], index: 4, kind: input, shape index: {}]   ;;  %s495_s5 = inlined_call_operand.vmem [shape: f32[16,128], index: 5, kind: output, shape index: {}]  }
   0x1   :  { %v37_v0 = vld [vmem:[%s490_s1 + $0x78] sm:$0xff]  ;;  %v36_v1 = vld [vmem:[%s490_s1 + $0x70] sm:$0xff]  ;;  %v35_v2 = vld [vmem:[%s490_s1 + $0x68] sm:$0xff] }
   0x2   :  { %272 = vmatprep.subr.mxu0 %v37_v0  ;;  %v34_v3 = vld [vmem:[%s490_s1 + $0x60] sm:$0xff]  ;;  %v33_v5 = vld [vmem:[%s490_s1 + $0x58] sm:$0xff]  ;;  %v144_v7 = vld [vmem:[%s492_s3 + $0x70] sm:$0xff] }
   0x3   :  { %273 = vmatpush3.msra.mxu0 %v37_v0  ;;  %v20_v4 = vld [vmem:[%s491_s0] sm:$0xff]  ;;  %v145_v6 = vld [vmem:[%s492_s3 + $0x78] sm:$0xff]  ;;  %v32_v8 = vld [vmem:[%s490_s1 + $0x50] sm:$0xff] }
   0x4   :  { %274 = vmatprep.subr.mxu0 %v36_v1  ;;  %304 = vmatprep.mubr.f32.mxu0 %v20_v4  ;;  %v143_v9 = vld [vmem:[%s492_s3 + $0x68] sm:$0xff]  ;;  %v30_v11 = vld [vmem:[%s490_s1 + $0x40] sm:$0xff]  ;;  %v29_v12 = vld [vmem:[%s490_s1 + $0x38] sm:$0xff] }
   0x5   :  { %275 = vmatpush3.msra.mxu0 %v36_v1  ;;  %307 = vmatprep.subr.mxu1 %v145_v6  ;;  %v31_v10 = vld [vmem:[%s490_s1 + $0x48] sm:$0xff]  ;;  %v28_v13 = vld [vmem:[%s490_s1 + $0x30] sm:$0xff]  ;;  %v26_v15 = vld [vmem:[%s490_s1 + $0x20] sm:$0xff] }
   0x6   :  { %276 = vmatprep.subr.mxu0 %v35_v2  ;;  %308 = vmatpush3.msra.mxu1 %v145_v6  ;;  %v27_v14 = vld [vmem:[%s490_s1 + $0x28] sm:$0xff]  ;;  %v25_v16 = vld [vmem:[%s490_s1 + $0x18] sm:$0xff]  ;;  %v24_v17 = vld [vmem:[%s490_s1 + $0x10] sm:$0xff] }
   0x7   :  { %277 = vmatpush3.msra.mxu0 %v35_v2  ;;  %309 = vmatprep.subr.mxu1 %v144_v7  ;;  %v23_v18 = vld [vmem:[%s490_s1 + $0x8] sm:$0xff]  ;;  %v22_v19 = vld [vmem:[%s490_s1] sm:$0xff]  ;;  %v141_v22 = vld [vmem:[%s492_s3 + $0x58] sm:$0xff] }
   0x8   :  { %278 = vmatprep.subr.mxu0 %v34_v3  ;;  %310 = vmatpush3.msra.mxu1 %v144_v7  ;;  %v21_v20 = vld [vmem:[%s491_s0 + $0x8] sm:$0xff]  ;;  %v142_v21 = vld [vmem:[%s492_s3 + $0x60] sm:$0xff]  ;;  %v140_v23 = vld [vmem:[%s492_s3 + $0x50] sm:$0xff] }
   0x9   :  { %279 = vmatpush3.msra.mxu0 %v34_v3  ;;  %311 = vmatprep.subr.mxu1 %v143_v9  ;;  %v139_v24 = vld [vmem:[%s492_s3 + $0x48] sm:$0xff]  ;;  %v138_v25 = vld [vmem:[%s492_s3 + $0x40] sm:$0xff]  ;;  %v137_v26 = vld [vmem:[%s492_s3 + $0x38] sm:$0xff] }
   0xa   :  { %280 = vmatprep.subr.mxu0 %v33_v5  ;;  %312 = vmatpush3.msra.mxu1 %v143_v9  ;;  %v136_v27 = vld [vmem:[%s492_s3 + $0x30] sm:$0xff]  ;;  %v135_v28 = vld [vmem:[%s492_s3 + $0x28] sm:$0xff]  ;;  %v134_v29 = vld [vmem:[%s492_s3 + $0x20] sm:$0xff] }
   0xb   :  { %281 = vmatpush3.msra.mxu0 %v33_v5  ;;  %313 = vmatprep.subr.mxu1 %v142_v21  ;;  %v133_v30 = vld [vmem:[%s492_s3 + $0x18] sm:$0xff]  ;;  %v132_v31 = vld [vmem:[%s492_s3 + $0x10] sm:$0xff]  ;;  %v131_v32 = vld [vmem:[%s492_s3 + $0x8] sm:$0xff] }
   0xc   :  { %282 = vmatprep.subr.mxu0 %v32_v8  ;;  %314 = vmatpush3.msra.mxu1 %v142_v21  ;;  %v130_v33 = vld [vmem:[%s492_s3] sm:$0xff] }
   0xd   :  { %283 = vmatpush3.msra.mxu0 %v32_v8  ;;  %315 = vmatprep.subr.mxu1 %v141_v22  ;;  %v234_v34 = vld [vmem:[%s493_s2] ss:$0 sm:$0xff] }
   0xe   :  { %284 = vmatprep.subr.mxu0 %v31_v10  ;;  %316 = vmatpush3.msra.mxu1 %v141_v22  ;;  %v235_v49 = vld [vmem:[%s494_s4] ss:$0 sm:$0xff] }
   0xf   :  { %285 = vmatpush3.msra.mxu0 %v31_v10  ;;  %317 = vmatprep.subr.mxu1 %v140_v23 }
  0x10   :  { %286 = vmatprep.subr.mxu0 %v30_v11  ;;  %318 = vmatpush3.msra.mxu1 %v140_v23 }
  0x11   :  { %287 = vmatpush3.msra.mxu0 %v30_v11  ;;  %319 = vmatprep.subr.mxu1 %v139_v24 }
  0x12   :  { %288 = vmatprep.subr.mxu0 %v29_v12  ;;  %320 = vmatpush3.msra.mxu1 %v139_v24 }
  0x13   :  { %289 = vmatpush3.msra.mxu0 %v29_v12  ;;  %321 = vmatprep.subr.mxu1 %v138_v25 }
  0x14   :  { %290 = vmatprep.subr.mxu0 %v28_v13  ;;  %322 = vmatpush3.msra.mxu1 %v138_v25 }
  0x15   :  { %291 = vmatpush3.msra.mxu0 %v28_v13  ;;  %323 = vmatprep.subr.mxu1 %v137_v26 }
  0x16   :  { %292 = vmatprep.subr.mxu0 %v27_v14  ;;  %324 = vmatpush3.msra.mxu1 %v137_v26 }
  0x17   :  { %293 = vmatpush3.msra.mxu0 %v27_v14  ;;  %325 = vmatprep.subr.mxu1 %v136_v27 }
  0x18   :  { %294 = vmatprep.subr.mxu0 %v26_v15  ;;  %326 = vmatpush3.msra.mxu1 %v136_v27 }
  0x19   :  { %295 = vmatpush3.msra.mxu0 %v26_v15  ;;  %327 = vmatprep.subr.mxu1 %v135_v28 }
  0x1a   :  { %296 = vmatprep.subr.mxu0 %v25_v16  ;;  %328 = vmatpush3.msra.mxu1 %v135_v28 }
  0x1b   :  { %297 = vmatpush3.msra.mxu0 %v25_v16  ;;  %329 = vmatprep.subr.mxu1 %v134_v29 }
  0x1c   :  { %298 = vmatprep.subr.mxu0 %v24_v17  ;;  %330 = vmatpush3.msra.mxu1 %v134_v29 }
  0x1d   :  { %299 = vmatpush3.msra.mxu0 %v24_v17  ;;  %331 = vmatprep.subr.mxu1 %v133_v30 }
  0x1e   :  { %300 = vmatprep.subr.mxu0 %v23_v18  ;;  %332 = vmatpush3.msra.mxu1 %v133_v30 }
  0x1f   :  { %301 = vmatpush3.msra.mxu0 %v23_v18  ;;  %333 = vmatprep.subr.mxu1 %v132_v31 }
  0x20   :  { %302 = vmatprep.subr.mxu0 %v22_v19  ;;  %334 = vmatpush3.msra.mxu1 %v132_v31 }
  0x21   :  { %303 = vmatpush3.msra.mxu0 %v22_v19  ;;  %335 = vmatprep.subr.mxu1 %v131_v32 }
  0x22   :  { %305 = vmatmul.mubr.f32.vlgmr.msra.gmra.mxu0 %v21_v20  ;;  %336 = vmatpush3.msra.mxu1 %v131_v32 }
  0x23   :  { %337 = vmatprep.subr.mxu1 %v130_v33 }
  0x24   :  { %338 = vmatpush3.msra.mxu1 %v130_v33 }
  0xe2   :  { %v306_v35 = vpop.f32.mrf.mxu0 }
  0xe3   :  { %v117_v36 = vadd.f32 %v306_v35, %v234_v34 }
  0xe4   :  { %v111_v37 = vpop.f32.mrf.mxu0 }
  0xe5   :  { %v123_v38 = vmul.f32 0.70710677, %v117_v36  ;;  %v112_v39 = vadd.f32 %v234_v34, %v111_v37  ;;  %v121_v46 = vmul.f32 0.5, %v117_v36 }
  0xe7   :  { %342 = verf.f32 %v123_v38  ;;  %v122_v40 = vmul.f32 0.70710677, %v112_v39  ;;  %v120_v44 = vmul.f32 0.5, %v112_v39 }
  0xe9   :  { %344 = verf.f32 %v122_v40 }
  0xf4   :  { %v343_v41 = vpop.eup %342 }
  0xf5   :  { %v127_v43 = vadd.f32 1.0, %v343_v41 }
  0xf6   :  { %v345_v42 = vpop.eup %344 }
  0xf7   :  { %v126_v45 = vadd.f32 1.0, %v345_v42  ;;  %v129_v48 = vmul.f32 %v127_v43, %v121_v46 }
  0xf9   :  { %v128_v47 = vmul.f32 %v126_v45, %v120_v44 }
  0xfb   :  { %339 = vmatprep.mubr.f32.mxu1 %v128_v47 }
  0xfc   :  { %340 = vmatmul.mubr.f32.vlgmr.msra.gmra.mxu1 %v129_v48 }
 0x1bc   :  { %v341_v50 = vpop.f32.mrf.mxu1 }
 0x1bd   :  { %v225_v51 = vadd.f32 %v341_v50, %v235_v49 }
 0x1be   :  { %v219_v52 = vpop.f32.mrf.mxu1 }
 0x1bf   :  { %229 = vst [vmem:[%s495_s5 + $0x8] sm:$0xff] %v225_v51  ;;  %v220_v53 = vadd.f32 %v235_v49, %v219_v52 }
 0x1c1   :  { %228 = vst [vmem:[%s495_s5] sm:$0xff] %v220_v53 }

</bundles_post_ra>
